<compile_context>
chip_gen: v7x
topology: tpu7x:2x2x1
jax: 0.10.0
libtpu: 0.0.40
codegen_flags: <defaults>
</compile_context>

<pallas_src>
import jax
import jax.numpy as jnp
from jax.experimental import pallas as pl
from jax.experimental.pallas import tpu as pltpu

D_IN = 32
D_HID = 64
PACK = 4                    # tokens packed per 128-lane row
D_PACK = PACK * D_IN        # 128
H_PACK = PACK * D_HID       # 256
LN_EPS = 1e-5
TM_P_MAX = 2048             # packed rows per tile (= 8192 tokens); ~1 MiB f32 per I/O
                            # buffer keeps the double-buffered working set well inside
                            # v5e's scoped VMEM and v7x's 64 MiB physical VMEM.


def _round_up(a, b):
    return ((a + b - 1) // b) * b


def _ffn_kernel(x_ref, avg_ref, w1_ref, b1_ref, w2_ref, b2_ref, o_ref):
    x = x_ref[...].astype(jnp.float32)                    # (TM_P, 128): 4 tokens / row

    # Per-token LayerNorm stats via block-diagonal averaging matmul (segmented mean/var).
    avg = avg_ref[...]                                     # (128, 128) block-diag of 1/32
    mean = jnp.dot(x, avg, preferred_element_type=jnp.float32)
    xc = x - mean
    var = jnp.dot(xc * xc, avg, preferred_element_type=jnp.float32)
    z = xc * jax.lax.rsqrt(var + LN_EPS)                   # gamma/beta folded into W1/b1

    # Linear(32 -> 64) + ReLU, 4 tokens per row via block-diagonal weights.
    h = jnp.dot(z, w1_ref[...], preferred_element_type=jnp.float32) + b1_ref[...]
    h = jnp.maximum(h, 0.0)

    # Linear(64 -> 32); Dropout(p=0.1) is identity in eval mode.
    y = jnp.dot(h, w2_ref[...], preferred_element_type=jnp.float32) + b2_ref[...]

    # Residual with the ORIGINAL (un-normalized) input.
    o_ref[...] = (x + y).astype(o_ref.dtype)


def fully_connected_output(x, w1, b1, w2, b2, gamma, beta):
    """x: [batch, seq, 32] -> [batch, seq, 32].

    w1: (32, 64), b1: (1, 64), w2: (64, 32), b2: (1, 32), gamma/beta: (1, 32).
    (Weights are in (in, out) layout, i.e. transposed relative to torch.nn.Linear.)
    """
    B, S, D = x.shape
    assert D == D_IN
    M = B * S

    # ---- pack 4 tokens per 128-lane row (free, row-major reshape) -------------
    m_p = _round_up(M, PACK) // PACK                  # packed rows needed
    tm_p = min(TM_P_MAX, _round_up(m_p, 8))           # tile rows (multiple of 8)
    m_p_pad = _round_up(m_p, tm_p)                    # pad so every tile is full
    tokens_pad = m_p_pad * PACK

    x2 = x.reshape(M, D)
    if tokens_pad != M:
        x2 = jnp.pad(x2, ((0, tokens_pad - M), (0, 0)))
    x_p = x2.reshape(m_p_pad, D_PACK)                 # (m_p_pad, 128)

    # ---- fold LayerNorm affine into the first Linear (exact, both linear) -----
    f32 = jnp.float32
    w1f = w1.astype(f32)
    w1_eff = gamma.reshape(D_IN, 1).astype(f32) * w1f                 # diag(gamma) @ W1
    b1_eff = b1.reshape(1, D_HID).astype(f32) \
        + beta.reshape(1, D_IN).astype(f32) @ w1f                     # b1 + beta @ W1

    # ---- build block-diagonal / tiled parameters (tiny, done once per call) ---
    eye = jnp.eye(PACK, dtype=f32)
    avg = jnp.kron(eye, jnp.full((D_IN, D_IN), 1.0 / D_IN, f32))      # (128, 128)
    w1_bd = jnp.kron(eye, w1_eff)                                     # (128, 256)
    w2_bd = jnp.kron(eye, w2.astype(f32))                             # (256, 128)
    b1_bd = jnp.tile(b1_eff, (1, PACK))                               # (1, 256)
    b2_bd = jnp.tile(b2.reshape(1, D_IN).astype(f32), (1, PACK))      # (1, 128)

    n_tiles = m_p_pad // tm_p
    const = lambda i: (0, 0)   # params stay resident across grid steps

    out_p = pl.pallas_call(
        _ffn_kernel,
        out_shape=jax.ShapeDtypeStruct((m_p_pad, D_PACK), x.dtype),
        grid_spec=pltpu.PrefetchScalarGridSpec(
            num_scalar_prefetch=0,
            grid=(n_tiles,),
            in_specs=[
                pl.BlockSpec((tm_p, D_PACK), lambda i: (i, 0)),     # x (packed)
                pl.BlockSpec((D_PACK, D_PACK), const),              # averaging matrix
                pl.BlockSpec((D_PACK, H_PACK), const),              # W1 block-diag (gamma folded)
                pl.BlockSpec((1, H_PACK), const),                   # b1 tiled (beta folded)
                pl.BlockSpec((H_PACK, D_PACK), const),              # W2 block-diag
                pl.BlockSpec((1, D_PACK), const),                   # b2 tiled
            ],
            out_specs=pl.BlockSpec((tm_p, D_PACK), lambda i: (i, 0)),
        ),
        compiler_params=pltpu.CompilerParams(
            dimension_semantics=("parallel",),        # v7x: shard row tiles across both TCs
            vmem_limit_bytes=32 * 1024 * 1024,        # headroom on all gens (<= v7x physical)
        ),
    )(x_p, avg, w1_bd, b1_bd, w2_bd, b2_bd)
    # TODO(synk): if xprof shows exposed input DMA at very large M, add
    # pipeline_mode=pl.Buffered(3) to the x BlockSpec.

    out2 = out_p.reshape(tokens_pad, D)[:M]
    return out2.reshape(B, S, D)


def _reference(x, w1, b1, w2, b2, gamma, beta):
    xf = x.astype(jnp.float32)
    mean = jnp.mean(xf, axis=-1, keepdims=True)
    var = jnp.mean((xf - mean) ** 2, axis=-1, keepdims=True)
    xn = (xf - mean) * jax.lax.rsqrt(var + LN_EPS) * gamma.reshape(1, 1, -1) \
        + beta.reshape(1, 1, -1)
    h = jnp.maximum(jnp.einsum("bsd,dh->bsh", xn, w1) + b1.reshape(1, 1, -1), 0.0)
    y = jnp.einsum("bsh,hd->bsd", h, w2) + b2.reshape(1, 1, -1)
    return (xf + y).astype(x.dtype)


if __name__ == "__main__":
    key = jax.random.PRNGKey(0)
    k_x, k_w1, k_b1, k_w2, k_b2, k_g, k_bt = jax.random.split(key, 7)

    B, S = 2, 8
    x = jax.random.normal(k_x, (B, S, D_IN), dtype=jnp.float32)

    # Deterministic parameter init (uniform, like PyTorch Linear default ranges).
    lim1 = 1.0 / (D_IN ** 0.5)
    lim2 = 1.0 / (D_HID ** 0.5)
    w1 = jax.random.uniform(k_w1, (D_IN, D_HID), jnp.float32, -lim1, lim1)
    b1 = jax.random.uniform(k_b1, (1, D_HID), jnp.float32, -lim1, lim1)
    w2 = jax.random.uniform(k_w2, (D_HID, D_IN), jnp.float32, -lim2, lim2)
    b2 = jax.random.uniform(k_b2, (1, D_IN), jnp.float32, -lim2, lim2)
    # Non-trivial LayerNorm affine to exercise the gamma/beta fold (default torch
    # init would be ones/zeros; semantics hold for arbitrary values).
    gamma = 1.0 + 0.1 * jax.random.normal(k_g, (1, D_IN), jnp.float32)
    beta = 0.1 * jax.random.normal(k_bt, (1, D_IN), jnp.float32)

    out = fully_connected_output(x, w1, b1, w2, b2, gamma, beta)
    out = jax.block_until_ready(out)

    ref = _reference(x, w1, b1, w2, b2, gamma, beta)
    assert out.shape == (B, S, D_IN)
    assert jnp.allclose(out, ref, atol=1e-4, rtol=1e-4), "mismatch vs reference"

    # TODO(synk): Dropout(p=0.1) is implemented as identity (eval mode); training-mode
    # dropout would use pltpu.prng_seed + pltpu.stateful_bernoulli inside the kernel.
    print("KERNEL_OK")
</pallas_src>

<mosaic_0001>
module attributes {stable_mosaic.version = 11 : i64} {
  func.func @_ffn_kernel(%arg0: i32, %arg1: memref<8x128xf32, #tpu.memory_space<vmem>>, %arg2: memref<128x128xf32, #tpu.memory_space<vmem>>, %arg3: memref<128x256xf32, #tpu.memory_space<vmem>>, %arg4: memref<1x256xf32, #tpu.memory_space<vmem>>, %arg5: memref<256x128xf32, #tpu.memory_space<vmem>>, %arg6: memref<1x128xf32, #tpu.memory_space<vmem>>, %arg7: memref<8x128xf32, #tpu.memory_space<vmem>>) attributes {dimension_semantics = [#tpu.dimension_semantics<parallel>], iteration_bounds = array<i64: 1>, scalar_prefetch = 0 : i64, scratch_operands = 0 : i64, tpu.core_type = #tpu.core_type<tc>, window_params = [{transform_indices = @transform_0, window_bounds = array<i64: 8, 128>}, {pipeline_mode = #tpu.pipeline_mode<synchronous>, transform_indices = @transform_1, window_bounds = array<i64: 128, 128>}, {pipeline_mode = #tpu.pipeline_mode<synchronous>, transform_indices = @transform_2, window_bounds = array<i64: 128, 256>}, {pipeline_mode = #tpu.pipeline_mode<synchronous>, transform_indices = @transform_3, window_bounds = array<i64: 1, 256>}, {pipeline_mode = #tpu.pipeline_mode<synchronous>, transform_indices = @transform_4, window_bounds = array<i64: 256, 128>}, {pipeline_mode = #tpu.pipeline_mode<synchronous>, transform_indices = @transform_5, window_bounds = array<i64: 1, 128>}, {transform_indices = @transform_6, window_bounds = array<i64: 8, 128>}]} {
    %c0 = arith.constant 0 : index
    %c0_0 = arith.constant 0 : index
    %0 = vector.load %arg1[%c0, %c0_0] : memref<8x128xf32, #tpu.memory_space<vmem>>, vector<8x128xf32>
    %c0_1 = arith.constant 0 : index
    %c0_2 = arith.constant 0 : index
    %1 = vector.load %arg2[%c0_1, %c0_2] : memref<128x128xf32, #tpu.memory_space<vmem>>, vector<128x128xf32>
    %cst = arith.constant dense<0.000000e+00> : vector<8x128xf32>
    %2 = tpu.matmul %0, %1, %cst {dimension_numbers = #tpu.dot_dimension_numbers<[1], [0], [0], [1], [0, 0, 1, 1], [], []>} : vector<8x128xf32>, vector<128x128xf32>, vector<8x128xf32> -> vector<8x128xf32>
    %3 = arith.subf %0, %2 : vector<8x128xf32>
    %4 = arith.mulf %3, %3 : vector<8x128xf32>
    %cst_3 = arith.constant dense<0.000000e+00> : vector<8x128xf32>
    %5 = tpu.matmul %4, %1, %cst_3 {dimension_numbers = #tpu.dot_dimension_numbers<[1], [0], [0], [1], [0, 0, 1, 1], [], []>} : vector<8x128xf32>, vector<128x128xf32>, vector<8x128xf32> -> vector<8x128xf32>
    %cst_4 = arith.constant 9.99999974E-6 : f32
    %6 = vector.broadcast %cst_4 : f32 to vector<8x128xf32>
    %7 = arith.addf %5, %6 : vector<8x128xf32>
    %8 = math.rsqrt %7 : vector<8x128xf32>
    %9 = arith.mulf %3, %8 : vector<8x128xf32>
    %c0_5 = arith.constant 0 : index
    %c0_6 = arith.constant 0 : index
    %10 = vector.load %arg3[%c0_5, %c0_6] : memref<128x256xf32, #tpu.memory_space<vmem>>, vector<128x256xf32>
    %cst_7 = arith.constant dense<0.000000e+00> : vector<8x256xf32>
    %11 = tpu.matmul %9, %10, %cst_7 {dimension_numbers = #tpu.dot_dimension_numbers<[1], [0], [0], [1], [0, 0, 1, 1], [], []>} : vector<8x128xf32>, vector<128x256xf32>, vector<8x256xf32> -> vector<8x256xf32>
    %c0_8 = arith.constant 0 : index
    %c0_9 = arith.constant 0 : index
    %12 = vector.load %arg4[%c0_8, %c0_9] : memref<1x256xf32, #tpu.memory_space<vmem>>, vector<1x256xf32>
    %13 = vector.broadcast %12 : vector<1x256xf32> to vector<8x256xf32>
    %14 = arith.addf %11, %13 : vector<8x256xf32>
    %cst_10 = arith.constant 0.000000e+00 : f32
    %15 = vector.broadcast %cst_10 : f32 to vector<8x256xf32>
    %16 = arith.maximumf %14, %15 : vector<8x256xf32>
    %c0_11 = arith.constant 0 : index
    %c0_12 = arith.constant 0 : index
    %17 = vector.load %arg5[%c0_11, %c0_12] : memref<256x128xf32, #tpu.memory_space<vmem>>, vector<256x128xf32>
    %cst_13 = arith.constant dense<0.000000e+00> : vector<8x128xf32>
    %18 = tpu.matmul %16, %17, %cst_13 {dimension_numbers = #tpu.dot_dimension_numbers<[1], [0], [0], [1], [0, 0, 1, 1], [], []>} : vector<8x256xf32>, vector<256x128xf32>, vector<8x128xf32> -> vector<8x128xf32>
    %c0_14 = arith.constant 0 : index
    %c0_15 = arith.constant 0 : index
    %19 = vector.load %arg6[%c0_14, %c0_15] : memref<1x128xf32, #tpu.memory_space<vmem>>, vector<1x128xf32>
    %20 = vector.broadcast %19 : vector<1x128xf32> to vector<8x128xf32>
    %21 = arith.addf %18, %20 : vector<8x128xf32>
    %22 = arith.addf %0, %21 : vector<8x128xf32>
    %c0_16 = arith.constant 0 : index
    %c0_17 = arith.constant 0 : index
    %23 = vector.load %arg7[%c0_16, %c0_17] : memref<8x128xf32, #tpu.memory_space<vmem>>, vector<8x128xf32>
    tpu.vector_store %arg7[%c0_16, %c0_17], %22 {strides = array<i32>} : memref<8x128xf32, #tpu.memory_space<vmem>>, vector<8x128xf32>,
    return
  }
  func.func @transform_0(%arg0: i32) -> (i32, i32) {
    %c0_i32 = arith.constant 0 : i32
    %c0_i32_0 = arith.constant 0 : i32
    return %arg0, %c0_i32 : i32, i32
  }
  func.func @transform_1(%arg0: i32) -> (i32, i32) {
    %c0_i32 = arith.constant 0 : i32
    %c0_i32_0 = arith.constant 0 : i32
    %c0_i32_1 = arith.constant 0 : i32
    return %c0_i32, %c0_i32_0 : i32, i32
  }
  func.func @transform_2(%arg0: i32) -> (i32, i32) {
    %c0_i32 = arith.constant 0 : i32
    %c0_i32_0 = arith.constant 0 : i32
    %c0_i32_1 = arith.constant 0 : i32
    return %c0_i32, %c0_i32_0 : i32, i32
  }
  func.func @transform_3(%arg0: i32) -> (i32, i32) {
    %c0_i32 = arith.constant 0 : i32
    %c0_i32_0 = arith.constant 0 : i32
    %c0_i32_1 = arith.constant 0 : i32
    return %c0_i32, %c0_i32_0 : i32, i32
  }
  func.func @transform_4(%arg0: i32) -> (i32, i32) {
    %c0_i32 = arith.constant 0 : i32
    %c0_i32_0 = arith.constant 0 : i32
    %c0_i32_1 = arith.constant 0 : i32
    return %c0_i32, %c0_i32_0 : i32, i32
  }
  func.func @transform_5(%arg0: i32) -> (i32, i32) {
    %c0_i32 = arith.constant 0 : i32
    %c0_i32_0 = arith.constant 0 : i32
    %c0_i32_1 = arith.constant 0 : i32
    return %c0_i32, %c0_i32_0 : i32, i32
  }
  func.func @transform_6(%arg0: i32) -> (i32, i32) {
    %c0_i32 = arith.constant 0 : i32
    %c0_i32_0 = arith.constant 0 : i32
    return %arg0, %c0_i32 : i32, i32
  }
}

</mosaic_0001>

<bundles_post_ra>
// kernel: tpu_custom_call.1
= control target key start
LH: loop header
LB: loop body
LE: loop exit
PB: predicated region body
PF: predicated region fallthrough
CT: control target
= control target key end

     0   :  { %11 = vsyncpa [#allocation3], 0  ;;  %s996_s0 = inlined_call_operand.hbm [shape: f32[8,128], index: 0, kind: input, shape index: {}]   ;;  %s997_s1 = inlined_call_operand.hbm [shape: f32[128,128], index: 1, kind: input, shape index: {}]   ;;  %s998_s2 = inlined_call_operand.hbm [shape: f32[128,256], index: 2, kind: input, shape index: {}]   ;;  %s999_s3 = inlined_call_operand.vmem [shape: f32[1,256], index: 3, kind: input, shape index: {}]   ;;  %s1000_s4 = inlined_call_operand.hbm [shape: f32[256,128], index: 4, kind: input, shape index: {}]   ;;  %s1001_s5 = inlined_call_operand.vmem [shape: f32[1,128], index: 5, kind: input, shape index: {}]   ;;  %s1002_s6 = inlined_call_operand.hbm [shape: f32[8,128], index: 6, kind: output, shape index: {}]  }
   0x1   :  { %12 = vsyncpa [#allocation6], 0 }
   0x2   :  { %13 = vsyncpa [#allocation9], 0 }
   0x3   :  { %14 = vsyncpa [#allocation4], 0  ;;  %s867_s21 = smov [#allocation5]   ;;  %s749_s25 = scalar_lea.hbm %s997_s1, 2048 }
   0x4   :  { %s30_s22 = sshll.u32 %s867_s21, 4  ;;  %p750_p0 = scmp.ne.s32.totalorder %s997_s1, %s749_s25  ;;  %s31_s22 = int_to_ptr.vmem [resolvable:$true] %s30_s22 }
   0x5   :  { %p753_p1 = scmp.lt.u32.totalorder %s749_s25, %s997_s1 }
   0x7   :  { %p755_p2 = pnand %p753_p1, %p750_p0 }
   0x9   :  { %758 = shalt.err (!%p755_p2)
}
   0xa   :  { %s759_s30 = scalar_lea.vmem %s31_s22, 2048  ;;  %p764_p4 = scmp.lt.s32.totalorder %s31_s22, %s31_s22 }
   0xb   :  { %p760_p3 = scmp.ne.s32.totalorder %s31_s22, %s759_s30  ;;  %p765_p5 = scmp.lt.s32.totalorder %s759_s30, %s759_s30 }
   0xd   :  { %p766_p6 = por %p765_p5, %p764_p4 }
   0xf   :  { %p767_p7 = pnand %p766_p6, %p760_p3 }
  0x11   :  { %770 = shalt.err (!%p767_p7)
}
  0x12   :  { %s868_s7 = smov 128   ;;  %s869_s8 = smov 8  }
  0x13   :  { %36 = dma.hbm_to_vmem [thread:$0]  %s997_s1, 2048, %s31_s22, [#allocation6], %s868_s7, %s868_s7, %s869_s8  }
  0x14   :  { %s870_s11 = smov [#allocation2]   ;;  %s871_s13 = smov [#allocation7]  }
  0x15   :  { %s21_s12 = sshll.u32 %s870_s11, 4  ;;  %s42_s14 = sshll.u32 %s871_s13, 4  ;;  %s22_s12 = int_to_ptr.vmem [resolvable:$true] %s21_s12  ;;  %s43_s14 = int_to_ptr.vmem [resolvable:$true] %s42_s14 }
  0x16   :  { %s771_s17 = scalar_lea.hbm %s996_s0, 128 }
  0x17   :  { %p772_p8 = scmp.ne.s32.totalorder %s996_s0, %s771_s17  ;;  %p775_p9 = scmp.lt.u32.totalorder %s771_s17, %s996_s0 }
  0x19   :  { %p777_p10 = pnand %p775_p9, %p772_p8 }
  0x1b   :  { %780 = shalt.err (!%p777_p10)
}
  0x1c   :  { %s781_s1 = scalar_lea.vmem %s22_s12, 128  ;;  %p786_p12 = scmp.lt.s32.totalorder %s22_s12, %s22_s12 }
  0x1d   :  { %p782_p11 = scmp.ne.s32.totalorder %s22_s12, %s781_s1  ;;  %p787_p13 = scmp.lt.s32.totalorder %s781_s1, %s781_s1 }
  0x1f   :  { %p788_p0 = por %p787_p13, %p786_p12 }
  0x21   :  { %p789_p1 = pnand %p788_p0, %p782_p11 }
  0x23   :  { %792 = shalt.err (!%p789_p1)
}
  0x24   :  { %24 = dma.hbm_to_vmem [thread:$0]  %s996_s0, 128, %s22_s12, [#allocation3]  }
  0x25   :  { %s793_s26 = scalar_lea.hbm %s998_s2, 4096 }
  0x26   :  { %p794_p2 = scmp.ne.s32.totalorder %s998_s2, %s793_s26  ;;  %p797_p3 = scmp.lt.u32.totalorder %s793_s26, %s998_s2 }
  0x28   :  { %p799_p4 = pnand %p797_p3, %p794_p2 }
  0x2a   :  { %802 = shalt.err (!%p799_p4)
}
  0x2b   :  { %s803_s9 = scalar_lea.vmem %s43_s14, 4096  ;;  %p808_p6 = scmp.lt.s32.totalorder %s43_s14, %s43_s14 }
  0x2c   :  { %p804_p5 = scmp.ne.s32.totalorder %s43_s14, %s803_s9  ;;  %p809_p7 = scmp.lt.s32.totalorder %s803_s9, %s803_s9 }
  0x2e   :  { %p810_p8 = por %p809_p7, %p808_p6 }
  0x30   :  { %p811_p9 = pnand %p810_p8, %p804_p5 }
  0x32   :  { %814 = shalt.err (!%p811_p9)
}
  0x33   :  { %s872_s0 = smov 256   ;;  %s873_s10 = smov 16  }
  0x34   :  { %48 = dma.hbm_to_vmem [thread:$0]  %s998_s2, 4096, %s43_s14, [#allocation6], %s872_s0, %s872_s0, %s873_s10  }
  0x35   :  { %s874_s13 = smov [#allocation8]   ;;  %s815_s18 = scalar_lea.hbm %s1000_s4, 4096 }
  0x36   :  { %s56_s15 = sshll.u32 %s874_s13, 4  ;;  %p816_p10 = scmp.ne.s32.totalorder %s1000_s4, %s815_s18  ;;  %s57_s15 = int_to_ptr.vmem [resolvable:$true] %s56_s15 }
  0x37   :  { %p819_p11 = scmp.lt.u32.totalorder %s815_s18, %s1000_s4 }
  0x39   :  { %p821_p12 = pnand %p819_p11, %p816_p10 }
  0x3b   :  { %824 = shalt.err (!%p821_p12)
}
  0x3c   :  { %s825_s22 = scalar_lea.vmem %s57_s15, 4096  ;;  %p830_p0 = scmp.lt.s32.totalorder %s57_s15, %s57_s15 }
  0x3d   :  { %p826_p13 = scmp.ne.s32.totalorder %s57_s15, %s825_s22  ;;  %p831_p1 = scmp.lt.s32.totalorder %s825_s22, %s825_s22 }
  0x3f   :  { %p832_p2 = por %p831_p1, %p830_p0 }
  0x41   :  { %p833_p3 = pnand %p832_p2, %p826_p13 }
  0x43   :  { %836 = shalt.err (!%p833_p3)
}
  0x44   :  { %62 = dma.hbm_to_vmem [thread:$0]  %s1000_s4, 4096, %s57_s15, [#allocation9], %s868_s7, %s868_s7, %s869_s8  }
  0x45   :  { %859 = dma.done.wait [#allocation3], 128  }
  0x46   :  { %860 = vsyncadd [#allocation3], 4294967168 }
  0x47   :  { %861 = dma.done.wait [#allocation6], 6144  }
  0x48   :  { %862 = vsyncadd [#allocation6], 4294961152 }
  0x49   :  { %863 = dma.done.wait [#allocation9], 4096  }
  0x4a   :  { %864 = vsyncadd [#allocation9], 4294963200  ;;  %v875_v0 = vmov 0.0|0.0   ;;  %vm876_vm0 = vmmov 0   ;;  %v877_v1 = vmov 0.0   ;;  %v78_v2 = vld [vmem:[#allocation5] sm:$0xff] }
  0x4b   :  { %623 = vmatprep.subr.bf16.mxu0 %v875_v0  ;;  %585 = vmatprep.mubr.msk.f32.mxu0 %vm876_vm0, %v877_v1  ;;  %v79_v3 = vld [vmem:[#allocation5 + $0x8] sm:$0xff]  ;;  %v80_v4 = vld [vmem:[#allocation5 + $0x10] sm:$0xff]  ;;  %v81_v6 = vld [vmem:[#allocation5 + $0x18] sm:$0xff]  ;;  %s878_s24 = smov [#allocation10]  }
  0x4c   :  { %647 = vmatprep.subr.bf16.mxu1 %v875_v0  ;;  %620 = vmatprep.mubr.msk.f32.mxu1 %vm876_vm0, %v877_v1  ;;  %v624_v5 = vpack.c.bf16 %v79_v3, %v78_v2  ;;  %v627_v7 = vpack.c.bf16 %v81_v6, %v80_v4  ;;  %v82_v8 = vld [vmem:[#allocation5 + $0x20] sm:$0xff]  ;;  %v83_v9 = vld [vmem:[#allocation5 + $0x28] sm:$0xff]  ;;  %v84_v11 = vld [vmem:[#allocation5 + $0x30] sm:$0xff] }
  0x4d   :  { %v630_v10 = vpack.c.bf16 %v83_v9, %v82_v8  ;;  %v85_v12 = vld [vmem:[#allocation5 + $0x38] sm:$0xff]  ;;  %v86_v14 = vld [vmem:[#allocation5 + $0x40] sm:$0xff]  ;;  %v87_v15 = vld [vmem:[#allocation5 + $0x48] sm:$0xff] }
  0x4e   :  { %625 = vmatpush3.bf16.msra.mxu0 %v624_v5  ;;  %649 = vmatpush3.bf16.msra.mxu1 %v624_v5  ;;  %v633_v13 = vpack.c.bf16 %v85_v12, %v84_v11  ;;  %v636_v16 = vpack.c.bf16 %v87_v15, %v86_v14  ;;  %v88_v17 = vld [vmem:[#allocation5 + $0x50] sm:$0xff]  ;;  %v89_v18 = vld [vmem:[#allocation5 + $0x58] sm:$0xff]  ;;  %v90_v20 = vld [vmem:[#allocation5 + $0x60] sm:$0xff] }
  0x4f   :  { %626 = vmatprep.subr.bf16.mxu0 %v875_v0  ;;  %650 = vmatprep.subr.bf16.mxu1 %v875_v0  ;;  %v639_v19 = vpack.c.bf16 %v89_v18, %v88_v17  ;;  %v91_v21 = vld [vmem:[#allocation5 + $0x68] sm:$0xff]  ;;  %v92_v23 = vld [vmem:[#allocation5 + $0x70] sm:$0xff]  ;;  %v93_v24 = vld [vmem:[#allocation5 + $0x78] sm:$0xff] }
  0x50   :  { %v642_v22 = vpack.c.bf16 %v91_v21, %v90_v20  ;;  %v645_v25 = vpack.c.bf16 %v93_v24, %v92_v23  ;;  %v968_v26 = vld [vmem:[#allocation2] sm:$0xff]  ;;  %v239_v27 = vld [vmem:[#allocation7 + $0x8] sm:$0xff]  ;;  %v238_v29 = vld [vmem:[#allocation7] sm:$0xff] }
  0x51   :  { %v241_v28 = vld [vmem:[#allocation7 + $0x18] sm:$0xff]  ;;  %v240_v31 = vld [vmem:[#allocation7 + $0x10] sm:$0xff]  ;;  %v243_v32 = vld [vmem:[#allocation7 + $0x28] sm:$0xff] }
  0x52   :  { %628 = vmatpush3.bf16.msra.mxu0 %v627_v7  ;;  %652 = vmatpush3.bf16.msra.mxu1 %v627_v7  ;;  %v671_v30 = vpack.c.bf16 %v241_v28, %v239_v27  ;;  %v245_v33 = vld [vmem:[#allocation7 + $0x38] sm:$0xff]  ;;  %v673_v34 = vpack.c.bf16 %v240_v31, %v238_v29  ;;  %v242_v36 = vld [vmem:[#allocation7 + $0x20] sm:$0xff]  ;;  %v244_v37 = vld [vmem:[#allocation7 + $0x30] sm:$0xff] }
  0x53   :  { %629 = vmatprep.subr.bf16.mxu0 %v875_v0  ;;  %653 = vmatprep.subr.bf16.mxu1 %v875_v0  ;;  %v675_v35 = vpack.c.bf16 %v245_v33, %v243_v32  ;;  %v247_v38 = vld [vmem:[#allocation7 + $0x48] sm:$0xff]  ;;  %v249_v39 = vld [vmem:[#allocation7 + $0x58] sm:$0xff]  ;;  %v677_v40 = vpack.c.bf16 %v244_v37, %v242_v36  ;;  %v246_v42 = vld [vmem:[#allocation7 + $0x40] sm:$0xff] }
  0x54   :  { %v679_v41 = vpack.c.bf16 %v249_v39, %v247_v38  ;;  %v248_v43 = vld [vmem:[#allocation7 + $0x50] sm:$0xff]  ;;  %v251_v44 = vld [vmem:[#allocation7 + $0x68] sm:$0xff]  ;;  %v253_v45 = vld [vmem:[#allocation7 + $0x78] sm:$0xff] }
  0x55   :  { %v681_v46 = vpack.c.bf16 %v248_v43, %v246_v42  ;;  %v683_v47 = vpack.c.bf16 %v253_v45, %v251_v44  ;;  %v250_v48 = vld [vmem:[#allocation7 + $0x60] sm:$0xff]  ;;  %v252_v49 = vld [vmem:[#allocation7 + $0x70] sm:$0xff]  ;;  %v255_v55 = vld [vmem:[#allocation7 + $0x88] sm:$0xff] }
  0x56   :  { %631 = vmatpush3.bf16.msra.mxu0 %v630_v10  ;;  %655 = vmatpush3.bf16.msra.mxu1 %v630_v10  ;;  %v685_v50 = vpack.c.bf16 %v252_v49, %v250_v48  ;;  %v257_v56 = vld [vmem:[#allocation7 + $0x98] sm:$0xff]  ;;  %v254_v58 = vld [vmem:[#allocation7 + $0x80] sm:$0xff]  ;;  %v256_v59 = vld [vmem:[#allocation7 + $0x90] sm:$0xff] }
  0x57   :  { %632 = vmatprep.subr.bf16.mxu0 %v875_v0  ;;  %656 = vmatprep.subr.bf16.mxu1 %v875_v0  ;;  %v687_v57 = vpack.c.bf16 %v257_v56, %v255_v55  ;;  %v689_v60 = vpack.c.bf16 %v256_v59, %v254_v58  ;;  %v259_v61 = vld [vmem:[#allocation7 + $0xa8] sm:$0xff]  ;;  %v261_v62 = vld [vmem:[#allocation7 + $0xb8] sm:$0xff]  ;;  %v262_v5 = vld [vmem:[#allocation7 + $0xc0] sm:$0xff] }
  0x58   :  { %v691_v63 = vpack.c.bf16 %v261_v62, %v259_v61  ;;  %v263_v3 = vld [vmem:[#allocation7 + $0xc8] sm:$0xff]  ;;  %v265_v4 = vld [vmem:[#allocation7 + $0xd8] sm:$0xff]  ;;  %v264_v7 = vld [vmem:[#allocation7 + $0xd0] sm:$0xff] }
  0x59   :  { %v695_v6 = vpack.c.bf16 %v265_v4, %v263_v3  ;;  %v267_v8 = vld [vmem:[#allocation7 + $0xe8] sm:$0xff]  ;;  %v269_v9 = vld [vmem:[#allocation7 + $0xf8] sm:$0xff]  ;;  %v697_v10 = vpack.c.bf16 %v264_v7, %v262_v5  ;;  %v266_v12 = vld [vmem:[#allocation7 + $0xe0] sm:$0xff] }
  0x5a   :  { %634 = vmatpush3.bf16.msra.mxu0 %v633_v13  ;;  %658 = vmatpush3.bf16.msra.mxu1 %v633_v13  ;;  %v699_v11 = vpack.c.bf16 %v269_v9, %v267_v8  ;;  %v268_v13 = vld [vmem:[#allocation7 + $0xf0] sm:$0xff]  ;;  %v371_v15 = vld [vmem:[#allocation8 + $0x80] sm:$0xff]  ;;  %v374_v21 = vld [vmem:[#allocation8 + $0x98] sm:$0xff] }
  0x5b   :  { %635 = vmatprep.subr.bf16.mxu0 %v875_v0  ;;  %659 = vmatprep.subr.bf16.mxu1 %v875_v0  ;;  %v701_v14 = vpack.c.bf16 %v268_v13, %v266_v12  ;;  %v355_v17 = vld [vmem:[#allocation8] sm:$0xff]  ;;  %v373_v20 = vld [vmem:[#allocation8 + $0x90] sm:$0xff]  ;;  %v376_v28 = vld [vmem:[#allocation8 + $0xa8] sm:$0xff] }
  0x5c   :  { %v707_v23 = vpack.c.bf16 %v374_v21, %v373_v20  ;;  %v357_v24 = vld [vmem:[#allocation8 + $0x10] sm:$0xff]  ;;  %v375_v27 = vld [vmem:[#allocation8 + $0xa0] sm:$0xff]  ;;  %v360_v32 = vld [vmem:[#allocation8 + $0x28] sm:$0xff] }
  0x5d   :  { %v359_v31 = vld [vmem:[#allocation8 + $0x20] sm:$0xff]  ;;  %v377_v33 = vld [vmem:[#allocation8 + $0xb0] sm:$0xff]  ;;  %v362_v38 = vld [vmem:[#allocation8 + $0x38] sm:$0xff] }
  0x5e   :  { %637 = vmatpush3.bf16.msra.mxu0 %v636_v16  ;;  %661 = vmatpush3.bf16.msra.mxu1 %v636_v16  ;;  %v372_v16 = vld [vmem:[#allocation8 + $0x88] sm:$0xff]  ;;  %v361_v37 = vld [vmem:[#allocation8 + $0x30] sm:$0xff]  ;;  %v379_v39 = vld [vmem:[#allocation8 + $0xc0] sm:$0xff] }
  0x5f   :  { %638 = vmatprep.subr.bf16.mxu0 %v875_v0  ;;  %662 = vmatprep.subr.bf16.mxu1 %v875_v0  ;;  %v703_v18 = vpack.c.bf16 %v372_v16, %v371_v15  ;;  %v363_v43 = vld [vmem:[#allocation8 + $0x40] sm:$0xff]  ;;  %v364_v44 = vld [vmem:[#allocation8 + $0x48] sm:$0xff]  ;;  %v381_v45 = vld [vmem:[#allocation8 + $0xd0] sm:$0xff] }
  0x60   :  { %v365_v49 = vld [vmem:[#allocation8 + $0x50] sm:$0xff]  ;;  %v367_v61 = vld [vmem:[#allocation8 + $0x60] sm:$0xff]  ;;  %v368_v62 = vld [vmem:[#allocation8 + $0x68] sm:$0xff] }
  0x61   :  { %v369_v3 = vld [vmem:[#allocation8 + $0x70] sm:$0xff]  ;;  %v370_v4 = vld [vmem:[#allocation8 + $0x78] sm:$0xff] }
  0x62   :  { %640 = vmatpush3.bf16.msra.mxu0 %v639_v19  ;;  %664 = vmatpush3.bf16.msra.mxu1 %v639_v19  ;;  %v356_v19 = vld [vmem:[#allocation8 + $0x8] sm:$0xff]  ;;  %v733_v5 = vpack.c.bf16 %v370_v4, %v369_v3 }
  0x63   :  { %641 = vmatprep.subr.bf16.mxu0 %v875_v0  ;;  %665 = vmatprep.subr.bf16.mxu1 %v875_v0 }
  0x66   :  { %643 = vmatpush3.bf16.msra.mxu0 %v642_v22  ;;  %667 = vmatpush3.bf16.msra.mxu1 %v642_v22  ;;  %v705_v22 = vpack.c.bf16 %v356_v19, %v355_v17  ;;  %v483_v19 = vld [vmem:[%s1001_s5] ss:$0 sm:$0xff] }
  0x67   :  { %644 = vmatprep.subr.bf16.mxu0 %v875_v0  ;;  %668 = vmatprep.subr.bf16.mxu1 %v875_v0  ;;  %v258_v0 = vld [vmem:[#allocation7 + $0xa0] sm:$0xff] }
  0x6a   :  { %646 = vmatpush3.bf16.msra.mxu0 %v645_v25  ;;  %670 = vmatpush3.bf16.msra.mxu1 %v645_v25  ;;  %v358_v25 = vld [vmem:[#allocation8 + $0x18] sm:$0xff] }
  0x6b   :  { %672 = vmatprep.subr.bf16.mxu0 %v671_v30  ;;  %704 = vmatprep.subr.bf16.mxu1 %v703_v18  ;;  %v709_v29 = vpack.c.bf16 %v358_v25, %v357_v24  ;;  %v711_v30 = vpack.c.bf16 %v376_v28, %v375_v27 }
  0x6d   :  { %586 = vmatmul.mubr.f32.vlgmr.msra.gmra.mrb[0].mxu0 %v968_v26 }
  0x6e   :  { %346 = vmatprep.mubr.f32.mxu0 %v877_v1  ;;  %674 = vmatpush1.bf16.msra.mxu0 %v673_v34  ;;  %v260_v1 = vld [vmem:[#allocation7 + $0xb0] sm:$0xff]  ;;  %v378_v34 = vld [vmem:[#allocation8 + $0xb8] sm:$0xff] }
  0x6f   :  { %676 = vmatprep.subr.bf16.mxu0 %v675_v35  ;;  %v693_v2 = vpack.c.bf16 %v260_v1, %v258_v0  ;;  %v713_v35 = vpack.c.bf16 %v360_v32, %v359_v31  ;;  %v715_v36 = vpack.c.bf16 %v378_v34, %v377_v33  ;;  %v385_v0 = vld [vmem:[#allocation8 + $0xf0] sm:$0xff]  ;;  %v386_v1 = vld [vmem:[#allocation8 + $0xf8] sm:$0xff] }
  0x72   :  { %678 = vmatpush1.bf16.msra.mxu0 %v677_v40  ;;  %v380_v40 = vld [vmem:[#allocation8 + $0xc8] sm:$0xff] }
  0x73   :  { %680 = vmatprep.subr.bf16.mxu0 %v679_v41  ;;  %v717_v41 = vpack.c.bf16 %v362_v38, %v361_v37  ;;  %v719_v42 = vpack.c.bf16 %v380_v40, %v379_v39 }
  0x76   :  { %682 = vmatpush1.bf16.msra.mxu0 %v681_v46  ;;  %v382_v46 = vld [vmem:[#allocation8 + $0xd8] sm:$0xff] }
  0x77   :  { %684 = vmatprep.subr.bf16.mxu0 %v683_v47  ;;  %v721_v47 = vpack.c.bf16 %v364_v44, %v363_v43  ;;  %v723_v48 = vpack.c.bf16 %v382_v46, %v381_v45 }
  0x7a   :  { %686 = vmatpush1.bf16.msra.mxu0 %v685_v50  ;;  %v366_v50 = vld [vmem:[#allocation8 + $0x58] sm:$0xff] }
  0x7b   :  { %688 = vmatprep.subr.bf16.mxu0 %v687_v57 }
  0x7e   :  { %690 = vmatpush1.bf16.msra.mxu0 %v689_v60 }
  0x7f   :  { %692 = vmatprep.subr.bf16.mxu0 %v691_v63  ;;  %v729_v63 = vpack.c.bf16 %v368_v62, %v367_v61 }
  0x82   :  { %694 = vmatpush1.bf16.msra.mxu0 %v693_v2  ;;  %v731_v2 = vpack.c.bf16 %v386_v1, %v385_v0 }
  0x83   :  { %696 = vmatprep.subr.bf16.mxu0 %v695_v6  ;;  %v272_v6 = vlaneseq }
  0x85   :  { %v273_v7 = vshrl.u32 %v272_v6, 7 }
  0x86   :  { %698 = vmatpush1.bf16.msra.mxu0 %v697_v10 }
  0x87   :  { %700 = vmatprep.subr.bf16.mxu0 %v699_v11  ;;  %v274_v8 = vsub.s32 0, %v273_v7  ;;  %v278_v9 = vsub.s32 1, %v273_v7 }
  0x8a   :  { %702 = vmatpush1.bf16.msra.mxu0 %v701_v14 }
 0x140   :  { %v160_v51 = vpop.f32.mrb[0].mxu0 }
 0x141   :  { %v972_v52 = vsub.f32 %v968_v26, %v160_v51  ;;  %v587_v53 = vpop.f32.mrb[1].mxu0  ;;  %v383_v51 = vld [vmem:[#allocation8 + $0xe0] sm:$0xff] }
 0x142   :  { %v384_v53 = vld [vmem:[#allocation8 + $0xe8] sm:$0xff] }
 0x143   :  { %v165_v54 = vmul.f32 %v972_v52, %v972_v52  ;;  %v727_v55 = vpack.c.bf16 %v384_v53, %v383_v51 }
 0x145   :  { %621 = vmatmul.mubr.f32.vlgmr.msra.gmra.mrb[0].mxu1 %v165_v54  ;;  %v725_v54 = vpack.c.bf16 %v366_v50, %v365_v49 }
 0x146   :  { %706 = vmatpush3.bf16.msra.mxu1 %v705_v22 }
 0x147   :  { %708 = vmatprep.subr.bf16.mxu1 %v707_v23 }
 0x14a   :  { %710 = vmatpush3.bf16.msra.mxu1 %v709_v29 }
 0x14b   :  { %712 = vmatprep.subr.bf16.mxu1 %v711_v30 }
 0x14e   :  { %714 = vmatpush3.bf16.msra.mxu1 %v713_v35 }
 0x14f   :  { %716 = vmatprep.subr.bf16.mxu1 %v715_v36 }
 0x152   :  { %718 = vmatpush3.bf16.msra.mxu1 %v717_v41 }
 0x153   :  { %720 = vmatprep.subr.bf16.mxu1 %v719_v42 }
 0x156   :  { %722 = vmatpush3.bf16.msra.mxu1 %v721_v47 }
 0x157   :  { %724 = vmatprep.subr.bf16.mxu1 %v723_v48 }
 0x15a   :  { %726 = vmatpush3.bf16.msra.mxu1 %v725_v54 }
 0x15b   :  { %728 = vmatprep.subr.bf16.mxu1 %v727_v55 }
 0x15e   :  { %730 = vmatpush3.bf16.msra.mxu1 %v729_v63 }
 0x15f   :  { %732 = vmatprep.subr.bf16.mxu1 %v731_v2 }
 0x162   :  { %734 = vmatpush3.bf16.msra.mxu1 %v733_v5 }
 0x218   :  { %v232_v56 = vpop.f32.mrb[0].mxu1 }
 0x219   :  { %v233_v57 = vadd.f32 1e-05, %v232_v56  ;;  %v622_v58 = vpop.f32.mrb[1].mxu1 }
 0x21b   :  { %747 = vrsqrt.f32 %v233_v57 }
 0x225   :  { %v748_v59 = vpop.eup %747 }
 0x226   :  { %v237_v60 = vmul.f32 %v748_v59, %v972_v52  ;;  %v270_v52 = vld [vmem:[%s999_s3] sm:$0x3]  ;;  %s472_s3 = sshll.u32 %s878_s24, 4  ;;  %s473_s3 = int_to_ptr.vmem [resolvable:$true] %s472_s3 }
 0x227   :  { %v275_v10 = vrot.slane %v270_v52, %v274_v8  ;;  %v279_v11 = vrot.slane %v270_v52, %v278_v9  ;;  %s837_s25 = scalar_lea.vmem %s473_s3, 128  ;;  %p842_p5 = scmp.lt.s32.totalorder %s473_s3, %s473_s3 }
 0x228   :  { %347 = vmatmul.mubr.f32.vlgmr.msra.gmra.mrb[2].mxu0 %v237_v60  ;;  %p838_p4 = scmp.ne.s32.totalorder %s473_s3, %s837_s25  ;;  %p843_p6 = scmp.lt.s32.totalorder %s837_s25, %s837_s25 }
 0x22a   :  { %p844_p7 = por %p843_p6, %p842_p5 }
 0x22c   :  { %p845_p8 = pnand %p844_p7, %p838_p4 }
 0x2fb   :  { %v348_v12 = vpop.f32.mrb[2].mxu0 }
 0x2fc   :  { %v349_v13 = vadd.f32 %v348_v12, %v275_v10  ;;  %v350_v14 = vpop.f32.mrb[3].mxu0 }
 0x2fd   :  { %v351_v15 = vadd.f32 %v350_v14, %v279_v11 }
 0x2fe   :  { %v353_v17 = vmax.f32 %v349_v13, 0.0 }
 0x2ff   :  { %v354_v16 = vmax.f32 %v351_v15, 0.0 }
 0x301   :  { %458 = vmatprep.mubr.f32.mxu1 %v354_v16 }
 0x302   :  { %459 = vmatmul.mubr.f32.vlgmr.msra.gmra.mrb[2].mxu1 %v353_v17 }
 0x3d5   :  { %v550_v18 = vpop.f32.mrb[2].mxu1 }
 0x3d6   :  { %v551_v20 = vpop.f32.mrb[3].mxu1 }
 0x3d7   :  { %v552_v21 = vadd.f32 %v551_v20, %v550_v18 }
 0x3d9   :  { %v461_v22 = vadd.f32 %v552_v21, %v483_v19 }
 0x3db   :  { %v464_v23 = vadd.f32 %v461_v22, %v968_v26 }
 0x3dd   :  { %465 = vst [vmem:[#allocation10] sm:$0xff] %v464_v23 }
 0x3de   :  { %848 = shalt.err (!%p845_p8)
}
 0x3df   :  { %s849_s5 = scalar_lea.hbm %s1002_s6, 128 }
 0x3e0   :  { %p850_p9 = scmp.ne.s32.totalorder %s1002_s6, %s849_s5  ;;  %p853_p10 = scmp.lt.u32.totalorder %s849_s5, %s1002_s6 }
 0x3e2   :  { %p855_p11 = pnand %p853_p10, %p850_p9 }
 0x3e4   :  { %858 = shalt.err (!%p855_p11)
}
 0x3e5   :  { %475 = dma.vmem_to_hbm [thread:$0]  %s473_s3, 128, %s1002_s6, [#allocation4]  }
 0x3e6   :  { %865 = dma.done.wait [#allocation4], 128  }
 0x3e7   :  { %866 = vsyncadd [#allocation4], 4294967168 }
 0x3e8   :  { %479 = vsyncpa [#allocation3], 1 }
 0x3e9   :  { %480 = vsyncpa [#allocation6], 1 }
 0x3ea   :  { %481 = vsyncpa [#allocation9], 1 }
 0x3eb   :  { %482 = vsyncpa [#allocation4], 1 }

</bundles_post_ra>
